<compile_context>
chip_gen: v7x
topology: tpu7x:2x2x1
jax: 0.10.0
libtpu: 0.0.40
codegen_flags: <defaults>
</compile_context>

<pallas_src>
import functools

import jax
import jax.numpy as jnp
from jax.experimental import pallas as pl
from jax.experimental.pallas import tpu as pltpu

SEQ_LEN = 8      # L
BATCH = 2        # N
DIM = 32         # C
NUM_HEADS = 4    # H (dim % num_heads == 0)
HEAD_DIM = DIM // NUM_HEADS
NEG_INF = -1e30  # finite mask fill (diagonal always valid -> no 0/0)


# ----------------------------------------------------------------------------
# Kernel: fused in_proj -> multi-head attention -> out_proj for ONE batch element
# ----------------------------------------------------------------------------
def attention_kernel(x_ref, w_ref, bqkv_ref, bout_ref, o_ref, *, num_heads, causal):
    # x_ref    : (L, C)        bf16   one batch element's tokens
    # w_ref    : (H, C, 4*hd)  bf16   per-head packed [Wq | Wk | Wv | Wout]
    # bqkv_ref : (H, 1, 3*hd)  bf16   per-head packed [bq | bk | bv]
    # bout_ref : (1, C)        bf16   out_proj bias
    # o_ref    : (L, C)        f32
    L, C = x_ref.shape
    H = num_heads
    hd = C // H
    scale = hd ** -0.5

    x = x_ref[...]                                   # (L, C) bf16
    w = w_ref[...]                                   # (H, C, 4*hd) bf16
    b_qkv = bqkv_ref[...]                            # (H, 1, 3*hd) bf16

    # Head-batched QKV projection: one 3-D batched contraction, f32 accumulation.
    xb = jnp.broadcast_to(x[None], (H, L, C))        # cheap major-dim broadcast
    qkv = jnp.einsum('hlc,hck->hlk', xb, w[:, :, :3 * hd],
                     preferred_element_type=jnp.float32) + b_qkv      # (H, L, 3*hd) f32

    q = qkv[:, :, 0 * hd:1 * hd] * scale             # q scaled as in the module
    k = qkv[:, :, 1 * hd:2 * hd]
    v = qkv[:, :, 2 * hd:3 * hd]

    # Scores for all heads in ONE batched contraction (bf16 operands, f32 accumulate).
    s = jnp.einsum('hqd,hkd->hqk', q.astype(jnp.bfloat16), k.astype(jnp.bfloat16),
                   preferred_element_type=jnp.float32)                # (H, L, L)

    if causal:
        row = jax.lax.broadcasted_iota(jnp.int32, (L, L), 0)          # query index
        col = jax.lax.broadcasted_iota(jnp.int32, (L, L), 1)          # key index
        s = jnp.where((col > row)[None], NEG_INF, s)

    # Softmax over keys in f32; normalization via EUP reciprocal.
    s = s - jnp.max(s, axis=-1, keepdims=True)
    p = jnp.exp(s)
    denom = jnp.sum(p, axis=-1, keepdims=True)
    p = p * pl.reciprocal(denom, approx=True)

    # Context for all heads in ONE batched contraction.
    ctx = jnp.einsum('hqk,hkd->hqd', p.astype(jnp.bfloat16), v.astype(jnp.bfloat16),
                     preferred_element_type=jnp.float32)              # (H, L, hd)

    # out_proj folded per head: out[l,c] = sum_h sum_d ctx[h,l,d] * Wout[h,c,d] + b.
    outc = jnp.einsum('hqd,hcd->hqc', ctx.astype(jnp.bfloat16), w[:, :, 3 * hd:],
                      preferred_element_type=jnp.float32)             # (H, L, C)
    o_ref[...] = jnp.sum(outc, axis=0) + bout_ref[...].astype(jnp.float32)


# ----------------------------------------------------------------------------
# Host-side parameter packing (per-head slabs, bf16) + wrapper
# ----------------------------------------------------------------------------
def pack_params(in_proj_weight, in_proj_bias, out_proj_weight, out_proj_bias, num_heads):
    """Repack weights so every head's q/k/v/out columns are contiguous (host-side, free)."""
    C = out_proj_weight.shape[0]
    H = num_heads
    hd = C // H

    w_in_t = in_proj_weight.T                                   # (C_in, 3C) = [q | k | v]

    def per_head(cols):                                         # (C_in, C) -> (H, C_in, hd)
        return jnp.transpose(cols.reshape(C, H, hd), (1, 0, 2))

    wq = per_head(w_in_t[:, 0 * C:1 * C])
    wk = per_head(w_in_t[:, 1 * C:2 * C])
    wv = per_head(w_in_t[:, 2 * C:3 * C])
    # out = ctx_concat @ out_proj_weight.T; per head: Wout[h, c, d] = out_proj_weight[c, h*hd+d]
    wo = jnp.transpose(out_proj_weight.reshape(C, H, hd), (1, 0, 2))      # (H, C_out, hd)
    w_heads = jnp.concatenate([wq, wk, wv, wo], axis=-1).astype(jnp.bfloat16)  # (H, C, 4hd)

    bq = in_proj_bias[0 * C:1 * C].reshape(H, 1, hd)
    bk = in_proj_bias[1 * C:2 * C].reshape(H, 1, hd)
    bv = in_proj_bias[2 * C:3 * C].reshape(H, 1, hd)
    b_qkv = jnp.concatenate([bq, bk, bv], axis=-1).astype(jnp.bfloat16)   # (H, 1, 3hd)
    b_out = out_proj_bias.reshape(1, C).astype(jnp.bfloat16)              # (1, C)
    return w_heads, b_qkv, b_out


def attention_forward(x, w_heads, b_qkv, b_out, *, num_heads=NUM_HEADS, causal=True):
    """x: (L, N, C) exactly like the PyTorch module; returns (L, N, C) f32."""
    L, N, C = x.shape
    H = num_heads
    hd = C // H

    # Wrapper glue: batch-major layout for per-batch grid blocks, bf16 MXU operands.
    x_nlc = jnp.transpose(x, (1, 0, 2)).astype(jnp.bfloat16)    # (N, L, C)

    kernel = functools.partial(attention_kernel, num_heads=H, causal=causal)
    out_nlc = pl.pallas_call(
        kernel,
        out_shape=jax.ShapeDtypeStruct((N, L, C), jnp.float32),
        grid=(N,),                                              # one grid step per batch elem
        in_specs=[
            pl.BlockSpec((None, L, C), lambda n: (n, 0, 0)),        # tokens of batch n
            pl.BlockSpec((H, C, 4 * hd), lambda n: (0, 0, 0)),      # packed per-head weights
            pl.BlockSpec((H, 1, 3 * hd), lambda n: (0, 0, 0)),      # packed per-head qkv bias
            pl.BlockSpec((1, C), lambda n: (0, 0)),                 # out_proj bias
        ],
        out_specs=pl.BlockSpec((None, L, C), lambda n: (n, 0, 0)),
        compiler_params=pltpu.CompilerParams(
            dimension_semantics=("parallel",)),                 # v7x: 2 TCs split the batch
    )(x_nlc, w_heads, b_qkv, b_out)
    return jnp.transpose(out_nlc, (1, 0, 2))


# ----------------------------------------------------------------------------
# Pure-JAX reference mirroring the PyTorch Attention.forward (for verification)
# ----------------------------------------------------------------------------
def attention_reference(x, in_proj_weight, in_proj_bias, out_proj_weight, out_proj_bias,
                        num_heads, causal=True):
    L, N, C = x.shape
    hd = C // num_heads
    scale = hd ** -0.5
    hi = jax.lax.Precision.HIGHEST
    qkv = jnp.einsum('lnc,jc->lnj', x, in_proj_weight, precision=hi) + in_proj_bias
    q, k, v = jnp.split(qkv, 3, axis=-1)

    def heads(t):  # (L, N, C) -> (N*H, L, hd), batch index = n*H + h
        return t.reshape(L, N * num_heads, hd).transpose(1, 0, 2)

    q, k, v = heads(q), heads(k), heads(v)
    attn = jnp.einsum('bld,bmd->blm', q * scale, k, precision=hi)
    if causal:
        i = jnp.arange(L)
        attn = attn + jnp.where(i[None, :] > i[:, None], -jnp.inf, 0.0)
    attn = jax.nn.softmax(attn, axis=-1)
    o = jnp.einsum('blm,bmd->bld', attn, v, precision=hi)
    o = o.transpose(1, 0, 2).reshape(L, N, C)
    return jnp.einsum('lnc,oc->lno', o, out_proj_weight, precision=hi) + out_proj_bias


if __name__ == "__main__":
    key = jax.random.PRNGKey(0)
    kx, kw_in, kb_in, kw_out, kb_out = jax.random.split(key, 5)
    wscale = HEAD_DIM ** -0.5

    x = jax.random.normal(kx, (SEQ_LEN, BATCH, DIM), jnp.float32)            # (L, N, C)
    in_proj_weight = wscale * jax.random.normal(kw_in, (3 * DIM, DIM), jnp.float32)
    in_proj_bias = 0.02 * jax.random.normal(kb_in, (3 * DIM,), jnp.float32)
    out_proj_weight = wscale * jax.random.normal(kw_out, (DIM, DIM), jnp.float32)
    out_proj_bias = 0.02 * jax.random.normal(kb_out, (DIM,), jnp.float32)

    w_heads, b_qkv, b_out = pack_params(in_proj_weight, in_proj_bias,
                                        out_proj_weight, out_proj_bias, NUM_HEADS)

    out = attention_forward(x, w_heads, b_qkv, b_out, num_heads=NUM_HEADS, causal=True)
    jax.block_until_ready(out)

    ref = attention_reference(x, in_proj_weight, in_proj_bias,
                              out_proj_weight, out_proj_bias, NUM_HEADS, causal=True)
    assert out.shape == (SEQ_LEN, BATCH, DIM)
    assert bool(jnp.all(jnp.isfinite(out)))
    max_err = float(jnp.max(jnp.abs(out - ref)))
    # bf16 MXU operands with f32 accumulation vs the f32 reference -> looser tolerance.
    tol = 5e-2 * (1.0 + float(jnp.max(jnp.abs(ref))))
    assert max_err < tol, f"mismatch vs reference: {max_err} (tol {tol})"
    print("KERNEL_OK")
</pallas_src>

<mosaic_0001>
module attributes {stable_mosaic.version = 11 : i64} {
  func.func @attention_kernel(%arg0: i32, %arg1: memref<1x8x32xbf16, #tpu.memory_space<vmem>>, %arg2: memref<4x32x32xbf16, #tpu.memory_space<vmem>>, %arg3: memref<4x1x24xbf16, #tpu.memory_space<vmem>>, %arg4: memref<1x32xbf16, #tpu.memory_space<vmem>>, %arg5: memref<1x8x32xf32, #tpu.memory_space<vmem>>) attributes {dimension_semantics = [#tpu.dimension_semantics<parallel>], iteration_bounds = array<i64: 2>, scalar_prefetch = 0 : i64, scratch_operands = 0 : i64, tpu.core_type = #tpu.core_type<tc>, window_params = [{transform_indices = @transform_0, window_bounds = array<i64: 1, 8, 32>}, {pipeline_mode = #tpu.pipeline_mode<synchronous>, transform_indices = @transform_1, window_bounds = array<i64: 4, 32, 32>}, {pipeline_mode = #tpu.pipeline_mode<synchronous>, transform_indices = @transform_2, window_bounds = array<i64: 4, 1, 24>}, {pipeline_mode = #tpu.pipeline_mode<synchronous>, transform_indices = @transform_3, window_bounds = array<i64: 1, 32>}, {transform_indices = @transform_4, window_bounds = array<i64: 1, 8, 32>}]} {
    %c0 = arith.constant 0 : index
    %c0_0 = arith.constant 0 : index
    %c0_1 = arith.constant 0 : index
    %0 = vector.load %arg1[%c0, %c0_0, %c0_1] : memref<1x8x32xbf16, #tpu.memory_space<vmem>>, vector<1x8x32xbf16>
    %1 = vector.shape_cast %0 : vector<1x8x32xbf16> to vector<8x32xbf16>
    %c0_2 = arith.constant 0 : index
    %c0_3 = arith.constant 0 : index
    %c0_4 = arith.constant 0 : index
    %2 = vector.load %arg2[%c0_2, %c0_3, %c0_4] : memref<4x32x32xbf16, #tpu.memory_space<vmem>>, vector<4x32x32xbf16>
    %c0_5 = arith.constant 0 : index
    %c0_6 = arith.constant 0 : index
    %c0_7 = arith.constant 0 : index
    %3 = vector.load %arg3[%c0_5, %c0_6, %c0_7] : memref<4x1x24xbf16, #tpu.memory_space<vmem>>, vector<4x1x24xbf16>
    %4 = vector.shape_cast %1 : vector<8x32xbf16> to vector<1x8x32xbf16>
    %5 = vector.shape_cast %4 : vector<1x8x32xbf16> to vector<1x8x32xbf16>
    %6 = vector.broadcast %5 : vector<1x8x32xbf16> to vector<4x8x32xbf16>
    %7 = vector.extract_strided_slice %2 {offsets = [0, 0, 0], sizes = [4, 32, 24], strides = [1, 1, 1]} : vector<4x32x32xbf16> to vector<4x32x24xbf16>
    "tpu.trace_start"() <{level = 10 : i32, message = "hlc,hck->hlk"}> : () -> ()
    %cst = arith.constant dense<0.000000e+00> : vector<4x8x24xf32>
    %8 = tpu.matmul %6, %7, %cst {dimension_numbers = #tpu.dot_dimension_numbers<[2], [1], [1], [2], [0, 0, 0, 1, 1, 2], [0], [0]>} : vector<4x8x32xbf16>, vector<4x32x24xbf16>, vector<4x8x24xf32> -> vector<4x8x24xf32>
    "tpu.trace_stop"() : () -> ()
    %9 = arith.extf %3 : vector<4x1x24xbf16> to vector<4x1x24xf32>
    %10 = vector.broadcast %9 : vector<4x1x24xf32> to vector<4x8x24xf32>
    %11 = arith.addf %8, %10 : vector<4x8x24xf32>
    %12 = vector.extract_strided_slice %11 {offsets = [0, 0, 0], sizes = [4, 8, 8], strides = [1, 1, 1]} : vector<4x8x24xf32> to vector<4x8x8xf32>
    %cst_8 = arith.constant 0.353553385 : f32
    %13 = vector.broadcast %cst_8 : f32 to vector<4x8x8xf32>
    %14 = arith.mulf %12, %13 : vector<4x8x8xf32>
    %15 = vector.extract_strided_slice %11 {offsets = [0, 0, 8], sizes = [4, 8, 8], strides = [1, 1, 1]} : vector<4x8x24xf32> to vector<4x8x8xf32>
    %16 = vector.extract_strided_slice %11 {offsets = [0, 0, 16], sizes = [4, 8, 8], strides = [1, 1, 1]} : vector<4x8x24xf32> to vector<4x8x8xf32>
    %17 = arith.truncf %14 : vector<4x8x8xf32> to vector<4x8x8xbf16>
    %18 = arith.truncf %15 : vector<4x8x8xf32> to vector<4x8x8xbf16>
    "tpu.trace_start"() <{level = 10 : i32, message = "hqd,hkd->hqk"}> : () -> ()
    %cst_9 = arith.constant dense<0.000000e+00> : vector<4x8x8xf32>
    %19 = tpu.matmul %17, %18, %cst_9 {dimension_numbers = #tpu.dot_dimension_numbers<[2], [2], [1], [1], [0, 0, 0, 1, 1, 1], [0], [0]>} : vector<4x8x8xbf16>, vector<4x8x8xbf16>, vector<4x8x8xf32> -> vector<4x8x8xf32>
    "tpu.trace_stop"() : () -> ()
    %20 = tpu.iota {dimensions = array<i32: 0>} : vector<8x8xi32>
    %21 = tpu.iota {dimensions = array<i32: 1>} : vector<8x8xi32>
    %22 = arith.cmpi sgt, %21, %20 : vector<8x8xi32>
    %23 = vector.shape_cast %22 : vector<8x8xi1> to vector<1x8x8xi1>
    %cst_10 = arith.constant -1.000000e+30 : f32
    %24 = vector.shape_cast %23 : vector<1x8x8xi1> to vector<1x8x8xi1>
    %25 = vector.broadcast %24 : vector<1x8x8xi1> to vector<4x8x8xi1>
    %26 = vector.broadcast %cst_10 : f32 to vector<4x8x8xf32>
    %27 = arith.select %25, %26, %19 : vector<4x8x8xi1>, vector<4x8x8xf32>
    %cst_11 = arith.constant dense<0xFF800000> : vector<4x8xf32>
    %28 = vector.multi_reduction <maximumf>, %27, %cst_11 [2] : vector<4x8x8xf32> to vector<4x8xf32>
    %29 = vector.shape_cast %28 : vector<4x8xf32> to vector<4x8x1xf32>
    %30 = vector.broadcast %29 : vector<4x8x1xf32> to vector<4x8x8xf32>
    %31 = arith.subf %27, %30 : vector<4x8x8xf32>
    %32 = math.exp %31 : vector<4x8x8xf32>
    %cst_12 = arith.constant dense<0.000000e+00> : vector<4x8xf32>
    %33 = vector.multi_reduction <add>, %32, %cst_12 [2] : vector<4x8x8xf32> to vector<4x8xf32>
    %34 = vector.shape_cast %33 : vector<4x8xf32> to vector<4x8x1xf32>
    %35 = tpu.reciprocal %34 {approx = true} : vector<4x8x1xf32> -> vector<4x8x1xf32>
    %36 = vector.broadcast %35 : vector<4x8x1xf32> to vector<4x8x8xf32>
    %37 = arith.mulf %32, %36 : vector<4x8x8xf32>
    %38 = arith.truncf %37 : vector<4x8x8xf32> to vector<4x8x8xbf16>
    %39 = arith.truncf %16 : vector<4x8x8xf32> to vector<4x8x8xbf16>
    "tpu.trace_start"() <{level = 10 : i32, message = "hqk,hkd->hqd"}> : () -> ()
    %cst_13 = arith.constant dense<0.000000e+00> : vector<4x8x8xf32>
    %40 = tpu.matmul %38, %39, %cst_13 {dimension_numbers = #tpu.dot_dimension_numbers<[2], [1], [1], [2], [0, 0, 0, 1, 1, 2], [0], [0]>} : vector<4x8x8xbf16>, vector<4x8x8xbf16>, vector<4x8x8xf32> -> vector<4x8x8xf32>
    "tpu.trace_stop"() : () -> ()
    %41 = arith.truncf %40 : vector<4x8x8xf32> to vector<4x8x8xbf16>
    %42 = vector.extract_strided_slice %2 {offsets = [0, 0, 24], sizes = [4, 32, 8], strides = [1, 1, 1]} : vector<4x32x32xbf16> to vector<4x32x8xbf16>
    "tpu.trace_start"() <{level = 10 : i32, message = "hqd,hcd->hqc"}> : () -> ()
    %cst_14 = arith.constant dense<0.000000e+00> : vector<4x8x32xf32>
    %43 = tpu.matmul %41, %42, %cst_14 {dimension_numbers = #tpu.dot_dimension_numbers<[2], [2], [1], [1], [0, 0, 0, 1, 1, 1], [0], [0]>} : vector<4x8x8xbf16>, vector<4x32x8xbf16>, vector<4x8x32xf32> -> vector<4x8x32xf32>
    "tpu.trace_stop"() : () -> ()
    %cst_15 = arith.constant dense<0.000000e+00> : vector<8x32xf32>
    %44 = vector.multi_reduction <add>, %43, %cst_15 [0] : vector<4x8x32xf32> to vector<8x32xf32>
    %c0_16 = arith.constant 0 : index
    %c0_17 = arith.constant 0 : index
    %45 = vector.load %arg4[%c0_16, %c0_17] : memref<1x32xbf16, #tpu.memory_space<vmem>>, vector<1x32xbf16>
    %46 = arith.extf %45 : vector<1x32xbf16> to vector<1x32xf32>
    %47 = vector.broadcast %46 : vector<1x32xf32> to vector<8x32xf32>
    %48 = arith.addf %44, %47 : vector<8x32xf32>
    %c0_18 = arith.constant 0 : index
    %c0_19 = arith.constant 0 : index
    %c0_20 = arith.constant 0 : index
    %49 = vector.load %arg5[%c0_18, %c0_19, %c0_20] : memref<1x8x32xf32, #tpu.memory_space<vmem>>, vector<1x8x32xf32>
    %50 = vector.shape_cast %49 : vector<1x8x32xf32> to vector<8x32xf32>
    %51 = vector.shape_cast %48 : vector<8x32xf32> to vector<1x8x32xf32>
    tpu.vector_store %arg5[%c0_18, %c0_19, %c0_20], %51 {strides = array<i32>} : memref<1x8x32xf32, #tpu.memory_space<vmem>>, vector<1x8x32xf32>,
    return
  }
  func.func @transform_0(%arg0: i32) -> (i32, i32, i32) {
    %c0_i32 = arith.constant 0 : i32
    %c0_i32_0 = arith.constant 0 : i32
    %c0_i32_1 = arith.constant 0 : i32
    return %arg0, %c0_i32, %c0_i32_0 : i32, i32, i32
  }
  func.func @transform_1(%arg0: i32) -> (i32, i32, i32) {
    %c0_i32 = arith.constant 0 : i32
    %c0_i32_0 = arith.constant 0 : i32
    %c0_i32_1 = arith.constant 0 : i32
    %c0_i32_2 = arith.constant 0 : i32
    return %c0_i32, %c0_i32_0, %c0_i32_1 : i32, i32, i32
  }
  func.func @transform_2(%arg0: i32) -> (i32, i32, i32) {
    %c0_i32 = arith.constant 0 : i32
    %c0_i32_0 = arith.constant 0 : i32
    %c0_i32_1 = arith.constant 0 : i32
    %c0_i32_2 = arith.constant 0 : i32
    return %c0_i32, %c0_i32_0, %c0_i32_1 : i32, i32, i32
  }
  func.func @transform_3(%arg0: i32) -> (i32, i32) {
    %c0_i32 = arith.constant 0 : i32
    %c0_i32_0 = arith.constant 0 : i32
    %c0_i32_1 = arith.constant 0 : i32
    return %c0_i32, %c0_i32_0 : i32, i32
  }
  func.func @transform_4(%arg0: i32) -> (i32, i32, i32) {
    %c0_i32 = arith.constant 0 : i32
    %c0_i32_0 = arith.constant 0 : i32
    %c0_i32_1 = arith.constant 0 : i32
    return %arg0, %c0_i32, %c0_i32_0 : i32, i32, i32
  }
}

</mosaic_0001>

<bundles_post_ra>
// kernel: tpu_custom_call.1
= control target key start
LH: loop header
LB: loop body
LE: loop exit
PB: predicated region body
PF: predicated region fallthrough
CT: control target
= control target key end

     0   :  { %9 = vsyncpa [#allocation3], 0  ;;  %s2097_s0 = inlined_call_operand.hbm [shape: bf16[2,8,32], index: 0, kind: input, shape index: {}]   ;;  %s2098_s1 = inlined_call_operand.hbm [shape: bf16[4,32,32], index: 1, kind: input, shape index: {}]   ;;  %s2099_s2 = inlined_call_operand.vmem [shape: bf16[4,1,24], index: 2, kind: input, shape index: {}]   ;;  %s2100_s3 = inlined_call_operand.vmem [shape: bf16[1,32], index: 3, kind: input, shape index: {}]   ;;  %s2101_s4 = inlined_call_operand.hbm [shape: f32[2,8,32], index: 4, kind: output, shape index: {}]  }
   0x1   :  { %11 = vsyncpa [#allocation3 + $0x1], 0 }
   0x2   :  { %12 = vsyncpa [#allocation6], 0 }
   0x3   :  { %13 = vsyncpa [#allocation4], 0 }
   0x4   :  { %15 = vsyncpa [#allocation4 + $0x1], 0  ;;  %s1711_s15 = smov 0   ;;  %s1713_s16 = smov 0  }
   0x5   :  { %s1715_s17 = smov 0   ;;  %s1717_s18 = smov 0  }
   0x6 LB: > { %s1732_s19 = sadd.s32 4294967295, %s1674_s18   ;;  %s1268_s20 = sadd.s32 4294967294, %s1674_s18   ;;  %s1674_s18 = sphi %s1717_s18, %s2121_s18   ;;  %s1670_s17 = sphi %s1715_s17, %s2120_s17   ;;  %s1666_s16 = sphi %s1713_s16, %s2119_s16   ;;  %s1662_s15 = sphi %s1711_s15, %s2118_s15  }
   0x7   : > { %p41_p0 = scmp.ne.s32.totalorder %s1666_s16, %s1662_s15  ;;  %p2102_p1 = scmp.eq.s32.totalorder %s1732_s19, 0 }
   0x8   : > { %p134_p3 = scmp.eq.s32.totalorder %s1268_s20, 1  ;;  %p1269_p5 = scmp.ge.s32.totalorder %s1674_s18, 1 }
   0x9   : > { %p1741_p4 = por %p2102_p1, %p41_p0  ;;  %p141_p7 = scmp.lt.s32.totalorder %s1674_s18, 3 }
   0xa   : > { %p1746_p6 = por %p134_p3, %p41_p0  ;;  %s1676_s24 = smov [#allocation5]  }
   0xb   : > { %s2105_s21 = scalar_select %p1741_p4, 1, 0 }
   0xc   : > { %s2106_s22 = scalar_select %p1746_p6, 1, 0 }
   0xd   : > { %p1751_p8 = pnand %p1269_p5, %p141_p7  ;;  %s153_s25 = sshll.u32 %s1676_s24, 4  ;;  %s1755_s25 = int_to_ptr.vmem [resolvable:$true] %s153_s25 }
   0xe   : > { %s1767_s27 = sadd.s32 1, %s1674_s18   ;;  %s28_s28 = sadd.s32 1, %s1670_s17 }
   0xf   : > { %s2107_s23 = scalar_select %p1751_p8, 1, 0 }
  0x10   : > { %p1466_p9 = pneg %p1751_p8  ;;  %s25_s29 = ssub.s32 %s1674_s18, %s1767_s27 }
  0x11   : > { %s1546_s6 = scalar_lea.hbm %s2098_s1, 1024 }
  0x12   : > { %p1762_p11 = pnand %p1466_p9, %p2102_p1  ;;  %p1547_p12 = scmp.ne.s32.totalorder %s2098_s1, %s1546_s6 }
  0x13   : > { %p1553_p5 = scmp.lt.u32.totalorder %s1546_s6, %s2098_s1 }
  0x14   : > { %p1548_p13 = pneg %p1762_p11 }
  0x16   : > { %p1549_p0 = pnand %p1548_p13, %p1547_p12 }
  0x18   : > { %p1550_p3 = pneg %p1549_p0 }
  0x1a   : > { %p1555_p7 = pnand %p1553_p5, %p1550_p3 }
  0x1c   : > { %1558 = shalt.err (!%p1555_p7)
}
  0x1d   : > { %s1559_s11 = scalar_lea.vmem %s1755_s25, 1024  ;;  %p1567_p2 = scmp.lt.s32.totalorder %s1755_s25, %s1755_s25 }
  0x1e   : > { %p1560_p9 = scmp.ne.s32.totalorder %s1755_s25, %s1559_s11  ;;  %p1568_p6 = scmp.lt.s32.totalorder %s1559_s11, %s1559_s11 }
  0x20   : > { %p1562_p10 = pnand %p1560_p9, %p1548_p13  ;;  %p1569_p4 = por %p1568_p6, %p1567_p2 }
  0x22   : > { %p1563_p1 = pneg %p1562_p10 }
  0x24   : > { %p1570_p8 = pnand %p1569_p4, %p1563_p1 }
  0x26   : > { %1573 = shalt.err (!%p1570_p8)
}
  0x27   : > { %s1677_s12 = smov 64   ;;  %s1678_s13 = smov 4  }
  0x28   : > { %1469 = dma.hbm_to_vmem [thread:$0]  (!%p1762_p11), %s2098_s1, 1024, %s1755_s25, [#allocation6], %s1677_s12, %s1677_s12, %s1678_s13  }
  0x29   : > { %p26_p2 = scmp.eq.s32.totalorder %s25_s29, 0  ;;  %p35_p1 = scmp.ne.s32.totalorder %s1670_s17, %s1666_s16 }
  0x2a   : > { %p36_p4 = scmp.eq.s32.totalorder %s1674_s18, 0  ;;  %p1479_p6 = scmp.lt.s32.totalorder %s1674_s18, 2 }
  0x2b   : > { %s1798_s24 = scalar_select %p26_p2, %s1670_s17, %s28_s28  }
  0x2c   : > { %p37_p8 = por %p36_p4, %p35_p1  ;;  %p2109_p10 = scmp.eq.s32.totalorder %s1732_s19, 1 }
  0x2d   : > { %s173_s5 = sand.u32 1, %s1670_s17   ;;  %s1273_s6 = sshll.u32 %s1674_s18, 6 }
  0x2e   : > { %p1802_p12 = por %p2109_p10, %p35_p1  ;;  %s1272_s7 = sshll.u32 %s173_s5, 2 }
  0x2f   : > { %s1811_s9 = scalar_lea.hbm %s2097_s0, %s1273_s6  ;;  %s177_s25 = scalar_lea.vmem [#allocation2], %s1272_s7 }
  0x30   : > { %s184_s28 = sshll.u32 %s177_s25, 4  ;;  %p1813_p11 = pnand %p1479_p6, %p37_p8  ;;  %s1817_s28 = int_to_ptr.vmem [resolvable:$true] %s184_s28 }
  0x31   : > { %s174_s10 = scalar_lea.sflag [#allocation3], %s173_s5  ;;  %s1574_s11 = scalar_lea.hbm %s1811_s9, 64 }
  0x32   : > { %p1575_p13 = scmp.ne.s32.totalorder %s1811_s9, %s1574_s11  ;;  %p1576_p0 = pneg %p1813_p11 }
  0x33   : > { %s1579_s14 = scalar_lea.hbm %s2097_s0, 128  ;;  %p1580_p7 = scmp.lt.u32.totalorder %s1811_s9, %s2097_s0 }
  0x34   : > { %p1577_p3 = pnand %p1576_p0, %p1575_p13  ;;  %p1581_p9 = scmp.lt.u32.totalorder %s1579_s14, %s1574_s11 }
  0x35   : > { %p1583_p1 = scmp.lt.u32.totalorder %s1574_s11, %s1811_s9 }
  0x36   : > { %p1578_p5 = pneg %p1577_p3  ;;  %p1582_p2 = por %p1581_p9, %p1580_p7 }
  0x38   : > { %p1584_p4 = por %p1583_p1, %p1582_p2 }
  0x3a   : > { %p1585_p6 = pnand %p1584_p4, %p1578_p5 }
  0x3c   : > { %1588 = shalt.err (!%p1585_p6)
}
  0x3d   : > { %s1589_s5 = scalar_lea.vmem %s1817_s28, 64  ;;  %s1679_s7 = smov [#allocation2]  }
  0x3e   : > { %p1590_p8 = scmp.ne.s32.totalorder %s1817_s28, %s1589_s5  ;;  %s1594_s26 = sshll.u32 %s1679_s7, 4  ;;  %s1595_s26 = int_to_ptr.vmem [resolvable:$false] %s1594_s26 }
  0x3f   : > { %s1596_s8 = scalar_lea.vmem %s1595_s26, 128  ;;  %p1597_p3 = scmp.lt.s32.totalorder %s1817_s28, %s1595_s26 }
  0x40   : > { %p1592_p10 = pnand %p1590_p8, %p1576_p0  ;;  %p1598_p7 = scmp.lt.s32.totalorder %s1596_s8, %s1589_s5 }
  0x42   : > { %p1593_p13 = pneg %p1592_p10  ;;  %p1599_p9 = por %p1598_p7, %p1597_p3 }
  0x44   : > { %p1600_p2 = pnand %p1599_p9, %p1593_p13 }
  0x46   : > { %1603 = shalt.err (!%p1600_p2)
}
  0x47   : > { %1473 = dma.hbm_to_vmem [thread:$0]  (!%p1813_p11), %s1811_s9, 64, %s1817_s28, %s174_s10  }
  0x48   : > { %p2112_p5 = scmp.ne.s32.totalorder %s2107_s23, 0 }
  0x49   : > { %s1847_s25 = sand.u32 (!%p2112_p5), 1, %s1666_s16   ;;  %p2113_p0 = scmp.ne.s32.totalorder (!%p2112_p5), %s2105_s21, 0 }
  0x4a   : > { %193 = sbr.rel (%p2112_p5) target bundleno = 1429 (0x595), region = 36  ;;  %s1275_s11 = sshll.u32 (!%p2112_p5), %s1847_s25, 2 }
  0x4b   : > { %s196_s12 = scalar_lea.sflag (!%p2112_p5), [#allocation3], %s1847_s25  ;;  %s199_s13 = scalar_lea.vmem (!%p2112_p5), [#allocation2], %s1275_s11 }
  0x51   : > { %1649 = dma.done.wait (%p2113_p0), %s196_s12, 64  }
  0x52   : > { %1651 = vsyncadd (%p2113_p0), %s196_s12, 4294967232  ;;  %p2114_p1 = scmp.eq.s32.totalorder %s1732_s19, 0 }
  0x54   : > { %1653 = dma.done.wait (%p2114_p1), [#allocation6], 1024   ;;  %p2115_p11 = pmov %p2114_p1 }
  0x55   : > { %v1680_v0 = vmov 0.0   ;;  %vm1681_vm0 = vmmov 0   ;;  %v1865_v1 = vld [vmem:[#allocation5] sm:$0xff]   ;;  %v1867_v2 = vld [vmem:[#allocation5 + $0x10] sm:$0xff]   ;;  %v1870_v3 = vld [vmem:[#allocation5 + $0x8] sm:$0xff]   ;;  %vm282_vm1 = vcmask 261120   ;;  %v254_v10 = vlaneseq }
  0x56   : > { %1655 = vsyncadd (%p2115_p11), [#allocation6], 4294966272  ;;  %1346 = vmatprep.subr.bf16.mxu0 %v1680_v0  ;;  %1354 = vmatprep.subr.bf16.mxu1 %v1680_v0  ;;  %v1874_v4 = vld [vmem:[#allocation5 + $0x18] sm:$0xff]   ;;  %v1878_v6 = vld [vmem:[#allocation5 + $0x20] sm:$0xff]   ;;  %s1682_s6 = smov 120   ;;  %vm497_vm2 = vcmask 64512  }
  0x57   : > { %1350 = vmatprep.mubr.msk.bf16.mxu0 %vm1681_vm0, %v1680_v0  ;;  %1358 = vmatprep.mubr.msk.bf16.mxu1 %vm1681_vm0, %v1680_v0  ;;  %v229_v5 = vld [vmem:[%s199_s13] sm:$0xf]  ;;  %v1882_v7 = vld [vmem:[#allocation5 + $0x30] sm:$0xff]   ;;  %v1888_v8 = vld [vmem:[#allocation5 + $0x28] sm:$0xff]   ;;  %v1910_v11 = vshrl.u32 %v254_v10, 7  ;;  %s1683_s5 = smov 112  }
  0x58   : > { %1347 = vmatpush3.bf16.msra.mxu0 %v1865_v1  ;;  %1355 = vmatpush3.bf16.msra.mxu1 %v1867_v2  ;;  %v1892_v9 = vld [vmem:[#allocation5 + $0x38] sm:$0xff]   ;;  %vm755_vm4 = vcmask 1043456   ;;  %s1684_s7 = smov 104   ;;  %s1277_s11 = sshll.u32 %s1847_s25, 3 }
  0x59   : > { %1348 = vmatprep.subr.bf16.mxu0 %v1680_v0  ;;  %1356 = vmatprep.subr.bf16.mxu1 %v1680_v0  ;;  %v246_v12 = vld [vmem:[%s2099_s2] sm:$0x1]  ;;  %v247_v13 = vld [vmem:[%s2099_s2 + $0x1] sm:$0x1]  ;;  %v1919_v15 = vsub.s32 0, %v1910_v11  ;;  %s1303_s12 = sshll.u32 %s1732_s19, 7 }
  0x5a   : > { %v250_v14 = vunpack.c.l.bf16 %v246_v12  ;;  %v251_v16 = vunpack.c.l.bf16 %v247_v13  ;;  %v248_v19 = vld [vmem:[%s2099_s2 + $0x2] sm:$0x1]  ;;  %v249_v20 = vld [vmem:[%s2099_s2 + $0x3] sm:$0x1]  ;;  %v694_v12 = vand.u32 127, %v254_v10  ;;  %s227_s13 = scalar_lea.vmem [#allocation7], %s1277_s11  ;;  %s2052_s28 = scalar_lea.hbm %s2101_s4, %s1303_s12 }
  0x5b   : > { %v252_v25 = vunpack.c.l.bf16 %v248_v19  ;;  %v253_v29 = vunpack.c.l.bf16 %v249_v20  ;;  %s1188_s21 = sshll.u32 %s227_s13, 4  ;;  %s1175_s29 = scalar_lea.sflag [#allocation4], %s1847_s25  ;;  %s2054_s21 = int_to_ptr.vmem [resolvable:$true] %s1188_s21 }
  0x5c   : > { %1349 = vmatpush3.bf16.msra.mxu0 %v1870_v3  ;;  %1357 = vmatpush3.bf16.msra.mxu1 %v1874_v4  ;;  %v257_v17 = vrot.slane %v250_v14, %v1919_v15  ;;  %v261_v18 = vrot.slane %v251_v16, %v1919_v15  ;;  %vm695_vm3 = vcmp.gt.s32.totalorder %v694_v12, %v1910_v11  ;;  %s1604_s19 = scalar_lea.vmem %s2054_s21, 128  ;;  %s1685_s10 = smov [#allocation7]  }
  0x5d   : > { %1362 = vmatprep.subr.bf16.mxu0 %v1680_v0  ;;  %1370 = vmatprep.subr.bf16.mxu1 %v1680_v0  ;;  %v265_v35 = vrot.slane %v252_v25, %v1919_v15  ;;  %v269_v36 = vrot.slane %v253_v29, %v1919_v15  ;;  %p1605_p4 = scmp.ne.s32.totalorder %s2054_s21, %s1604_s19  ;;  %s1608_s14 = sshll.u32 %s1685_s10, 4  ;;  %s1609_s14 = int_to_ptr.vmem [resolvable:$false] %s1608_s14 }
  0x5e   : > { %s1610_s20 = scalar_lea.vmem %s1609_s14, 256  ;;  %p1611_p10 = scmp.lt.s32.totalorder %s2054_s21, %s1609_s14 }
  0x5f   : > { %1351 = vmatmul.mubr.msk.bf16.vlgmr.msra.gmra.mrb[0].mxu0 %vm282_vm1, %v229_v5  ;;  %1359 = vmatmul.mubr.msk.bf16.vlgmr.msra.gmra.mrb[0].mxu1 %vm282_vm1, %v229_v5  ;;  %p1606_p6 = pnand %p1605_p4, %p1802_p12  ;;  %p1612_p13 = scmp.lt.s32.totalorder %s1610_s20, %s1604_s19 }
  0x60   : > { %1363 = vmatpush3.bf16.msra.mxu0 %v1878_v6  ;;  %1371 = vmatpush3.bf16.msra.mxu1 %v1882_v7 }
  0x61   : > { %1364 = vmatprep.subr.bf16.mxu0 %v1680_v0  ;;  %1372 = vmatprep.subr.bf16.mxu1 %v1680_v0  ;;  %p1607_p8 = pneg %p1606_p6  ;;  %p1613_p3 = por %p1612_p13, %p1611_p10 }
  0x62   : > { %1366 = vmatprep.mubr.msk.bf16.mxu0 %vm1681_vm0, %v1680_v0  ;;  %1374 = vmatprep.mubr.msk.bf16.mxu1 %vm1681_vm0, %v1680_v0 }
  0x63   : > { %p1614_p7 = pnand %p1613_p3, %p1607_p8 }
  0x64   : > { %1365 = vmatpush3.bf16.msra.mxu0 %v1888_v8  ;;  %1373 = vmatpush3.bf16.msra.mxu1 %v1892_v9 }
  0x65   : > { %1378 = vmatprep.subr.bf16.mxu0 %v1680_v0  ;;  %1384 = vmatprep.subr.bf16.mxu1 %v1680_v0 }
  0x67   : > { %1367 = vmatmul.mubr.msk.bf16.vlgmr.msra.gmra.mrb[4].mxu0 %vm282_vm1, %v229_v5  ;;  %1375 = vmatmul.mubr.msk.bf16.vlgmr.msra.gmra.mrb[4].mxu1 %vm282_vm1, %v229_v5 }
  0x68   : > { %1380 = vmatprep.mubr.msk.bf16.mxu0 %vm1681_vm0, %v1680_v0  ;;  %1386 = vmatprep.mubr.msk.bf16.mxu1 %vm1681_vm0, %v1680_v0 }
 0x132   : > { %v320_v21 = vpop.f32.mrb[0].mxu0  ;;  %v372_v24 = vpop.f32.mrb[0].mxu1 }
 0x133   : > { %v321_v22 = vadd.f32 %v320_v21, %v257_v17  ;;  %v1352_v23 = vpop.f32.mrb[1].mxu0  ;;  %v373_v26 = vadd.f32 %v372_v24, %v261_v18  ;;  %v1360_v28 = vpop.f32.mrb[1].mxu1 }
 0x134   : > { %v323_v27 = vpop.f32.mrb[2].mxu0  ;;  %v375_v31 = vpop.f32.mrb[2].mxu1 }
 0x135   : > { %v1353_v30 = vpop.f32.mrb[3].mxu0  ;;  %v1929_v32 = vpack.c.bf16 %v321_v22, %v321_v22  ;;  %v1361_v33 = vpop.f32.mrb[3].mxu1  ;;  %v1931_v34 = vpack.c.bf16 %v373_v26, %v373_v26  ;;  %v482_v51 = vmul.f32 0.35355338, %v321_v22  ;;  %v483_v55 = vmul.f32 0.35355338, %v373_v26 }
 0x137   : > { %495 = vrot.lane.b32.xlu0 %v1929_v32, %s1682_s6  ;;  %v486_v54 = vpack.c.bf16 %v482_v51, %v482_v51  ;;  %v487_v58 = vpack.c.bf16 %v483_v55, %v483_v55 }
 0x13a   : > { %v424_v37 = vpop.f32.mrb[4].mxu0  ;;  %v476_v39 = vpop.f32.mrb[4].mxu1 }
 0x13b   : > { %v425_v38 = vadd.f32 %v424_v37, %v265_v35  ;;  %545 = vrot.lane.b32.xlu0 %v1931_v34, %s1682_s6  ;;  %v1368_v40 = vpop.f32.mrb[5].mxu0  ;;  %v477_v41 = vadd.f32 %v476_v39, %v269_v36  ;;  %v1376_v43 = vpop.f32.mrb[5].mxu1 }
 0x13c   : > { %v427_v42 = vpop.f32.mrb[6].mxu0  ;;  %v479_v45 = vpop.f32.mrb[6].mxu1 }
 0x13d   : > { %v1369_v44 = vpop.f32.mrb[7].mxu0  ;;  %v1937_v46 = vpack.c.bf16 %v425_v38, %v425_v38  ;;  %v1377_v47 = vpop.f32.mrb[7].mxu1  ;;  %v1939_v48 = vpack.c.bf16 %v477_v41, %v477_v41  ;;  %v484_v59 = vmul.f32 0.35355338, %v425_v38  ;;  %v485_v63 = vmul.f32 0.35355338, %v477_v41 }
 0x13f   : > { %594 = vrot.lane.b32.xlu1 %v1937_v46, %s1682_s6  ;;  %v488_v62 = vpack.c.bf16 %v484_v59, %v484_v59  ;;  %v489_v5 = vpack.c.bf16 %v485_v63, %v485_v63 }
 0x143   : > { %643 = vrot.lane.b32.xlu1 %v1939_v48, %s1682_s6 }
 0x1a9   : > { %v496_v49 = vpop.permute.xlu0 %495 }
 0x1aa   : > { %v502_v50 = vsel %vm497_vm2, %v496_v49, 0 }
 0x1ab   : > { %1379 = vmatpush3.bf16.xpose.msra.mxu0 %v502_v50 }
 0x1ac   : > { %1390 = vmatprep.subr.bf16.mxu0 %v1680_v0 }
 0x1ad   : > { %v546_v52 = vpop.permute.xlu0 %545 }
 0x1ae   : > { %v551_v53 = vsel %vm497_vm2, %v546_v52, 0 }
 0x1af   : > { %1385 = vmatpush3.bf16.xpose.msra.mxu1 %v551_v53 }
 0x1b0   : > { %1396 = vmatprep.subr.bf16.mxu1 %v1680_v0 }
 0x1b1   : > { %v595_v56 = vpop.permute.xlu1 %594 }
 0x1b2   : > { %v600_v57 = vsel %vm497_vm2, %v595_v56, 0  ;;  %1381 = vmatmul.mubr.msk.bf16.vlgmr.msra.gmra.mrb[8].mxu0 %vm497_vm2, %v486_v54 }
 0x1b3   : > { %1391 = vmatpush3.bf16.xpose.msra.mxu0 %v600_v57  ;;  %1392 = vmatprep.mubr.msk.bf16.mxu0 %vm1681_vm0, %v1680_v0 }
 0x1b4   : > { %1402 = vmatprep.subr.bf16.mxu0 %v1680_v0 }
 0x1b5   : > { %v644_v60 = vpop.permute.xlu1 %643 }
 0x1b6   : > { %v649_v61 = vsel %vm497_vm2, %v644_v60, 0  ;;  %1387 = vmatmul.mubr.msk.bf16.vlgmr.msra.gmra.mrb[8].mxu1 %vm497_vm2, %v487_v58 }
 0x1b7   : > { %1397 = vmatpush3.bf16.xpose.msra.mxu1 %v649_v61  ;;  %1398 = vmatprep.mubr.msk.bf16.mxu1 %vm1681_vm0, %v1680_v0 }
 0x1b8   : > { %1408 = vmatprep.subr.bf16.mxu1 %v1680_v0 }
 0x1ba   : > { %1393 = vmatmul.mubr.msk.bf16.vlgmr.msra.gmra.mrb[12].mxu0 %vm497_vm2, %v488_v62 }
 0x1bb   : > { %1404 = vmatprep.mubr.msk.bf16.mxu0 %vm1681_vm0, %v1680_v0 }
 0x1be   : > { %1399 = vmatmul.mubr.msk.bf16.vlgmr.msra.gmra.mrb[12].mxu1 %vm497_vm2, %v489_v5 }
 0x1bf   : > { %1410 = vmatprep.mubr.msk.bf16.mxu1 %vm1681_vm0, %v1680_v0 }
 0x285   : > { %v538_v13 = vpop.f32.mrb[8].mxu0 }
 0x286   : > { %v698_v14 = vsel %vm695_vm3, -1e+30, %v538_v13  ;;  %v1382_v16 = vpop.f32.mrb[9].mxu0 }
 0x287   : > { %v541_v17 = vpop.f32.mrb[10].mxu0  ;;  %v702_v18 = vsel %vm497_vm2, %v698_v14, -inf }
 0x288   : > { %703 = vmax.xlane.f32.xlu0 %v702_v18  ;;  %v1383_v19 = vpop.f32.mrb[11].mxu0 }
 0x289   : > { %v587_v20 = vpop.f32.mrb[8].mxu1 }
 0x28a   : > { %v699_v21 = vsel %vm695_vm3, -1e+30, %v587_v20  ;;  %v1388_v22 = vpop.f32.mrb[9].mxu1 }
 0x28b   : > { %v590_v23 = vpop.f32.mrb[10].mxu1  ;;  %v705_v10 = vsel %vm497_vm2, %v699_v21, -inf }
 0x28c   : > { %v1389_v24 = vpop.f32.mrb[11].mxu1  ;;  %706 = vmax.xlane.f32.xlu1 %v705_v10 }
 0x28d   : > { %v636_v25 = vpop.f32.mrb[12].mxu0 }
 0x28e   : > { %v700_v26 = vsel %vm695_vm3, -1e+30, %v636_v25  ;;  %v1394_v27 = vpop.f32.mrb[13].mxu0 }
 0x28f   : > { %v639_v28 = vpop.f32.mrb[14].mxu0  ;;  %v708_v29 = vsel %vm497_vm2, %v700_v26, -inf }
 0x290   : > { %709 = vmax.xlane.f32.xlu0 %v708_v29  ;;  %v1395_v30 = vpop.f32.mrb[15].mxu0 }
 0x291   : > { %v685_v31 = vpop.f32.mrb[12].mxu1 }
 0x292   : > { %v701_v33 = vsel %vm695_vm3, -1e+30, %v685_v31  ;;  %v1400_v35 = vpop.f32.mrb[13].mxu1 }
 0x293   : > { %v688_v36 = vpop.f32.mrb[14].mxu1  ;;  %v711_v37 = vsel %vm497_vm2, %v701_v33, -inf }
 0x294   : > { %v1401_v38 = vpop.f32.mrb[15].mxu1  ;;  %712 = vmax.xlane.f32.xlu0 %v711_v37 }
 0x29d   : > { %750 = vrot.lane.b32.xlu1 %v1929_v32, %s1683_s5 }
 0x315   : > { %v704_v39 = vpop.xlane.xlu0 %703 }
 0x316   : > { %v714_v40 = vsub.f32 %v698_v14, %v704_v39 }
 0x318   : > { %v718_v41 = vmul.f32 1.442695, %v714_v40 }
 0x319   : > { %v707_v42 = vpop.xlane.xlu1 %706 }
 0x31a   : > { %1530 = vpow2.f32 %v718_v41  ;;  %v715_v43 = vsub.f32 %v699_v21, %v707_v42 }
 0x31c   : > { %v720_v44 = vmul.f32 1.442695, %v715_v43 }
 0x31d   : > { %v751_v11 = vpop.permute.xlu1 %750  ;;  %v710_v45 = vpop.xlane.xlu0 %709 }
 0x31e   : > { %1532 = vpow2.f32 %v720_v44  ;;  %v757_v47 = vsel %vm755_vm4, %v751_v11, 0  ;;  %v716_v49 = vsub.f32 %v700_v26, %v710_v45 }
 0x31f   : > { %1403 = vmatpush3.bf16.msra.mxu0 %v757_v47 }
 0x320   : > { %v722_v50 = vmul.f32 1.442695, %v716_v49  ;;  %1414 = vmatprep.subr.bf16.mxu0 %v1680_v0 }
 0x321   : > { %v713_v51 = vpop.xlane.xlu0 %712 }
 0x322   : > { %1534 = vpow2.f32 %v722_v50  ;;  %v717_v32 = vsub.f32 %v701_v33, %v713_v51 }
 0x324   : > { %v1531_v52 = vpop.eup %1530  ;;  %v724_v53 = vmul.f32 1.442695, %v717_v32 }
 0x325   : > { %v726_v54 = vsel %vm497_vm2, %v1531_v52, 0.0 }
 0x326   : > { %1536 = vpow2.f32 %v724_v53  ;;  %727 = vadd.xlane.f32.xlu1 %v726_v54 }
 0x328   : > { %v1533_v55 = vpop.eup %1532 }
 0x329   : > { %v729_v56 = vsel %vm497_vm2, %v1533_v55, 0.0 }
 0x32a   : > { %730 = vadd.xlane.f32.xlu0 %v729_v56 }
 0x32c   : > { %v1535_v57 = vpop.eup %1534 }
 0x32d   : > { %v732_v58 = vsel %vm497_vm2, %v1535_v57, 0.0 }
 0x32e   : > { %733 = vadd.xlane.f32.xlu1 %v732_v58 }
 0x330   : > { %v1537_v59 = vpop.eup %1536 }
 0x331   : > { %v735_v60 = vsel %vm497_vm2, %v1537_v59, 0.0 }
 0x332   : > { %736 = vadd.xlane.f32.xlu0 %v735_v60 }
 0x33f   : > { %847 = vrot.lane.b32.xlu1 %v1937_v46, %s1683_s5 }
 0x343   : > { %895 = vrot.lane.b32.xlu1 %v1939_v48, %s1683_s5 }
 0x347   : > { %1000 = vrot.lane.b32.xlu1 %v1867_v2, %s1684_s7 }
 0x348   : > { %799 = vrot.lane.b32.xlu0 %v1931_v34, %s1683_s5 }
 0x34b   : > { %1002 = vrot.lane.b32.xlu1 %v1874_v4, %s1684_s7 }
 0x34c   : > { %947 = vrot.lane.b32.xlu0 %v1865_v1, %s1684_s7 }
 0x34f   : > { %1106 = vrot.lane.b32.xlu1 %v1882_v7, %s1684_s7 }
 0x350   : > { %949 = vrot.lane.b32.xlu0 %v1870_v3, %s1684_s7 }
 0x353   : > { %1108 = vrot.lane.b32.xlu1 %v1892_v9, %s1684_s7 }
 0x354   : > { %1053 = vrot.lane.b32.xlu0 %v1878_v6, %s1684_s7 }
 0x358   : > { %1055 = vrot.lane.b32.xlu0 %v1888_v8, %s1684_s7 }
 0x3b3   : > { %v728_v46 = vpop.xlane.xlu1 %727 }
 0x3b4   : > { %1538 = vrcp.f32 %v728_v46 }
 0x3b7   : > { %v731_v34 = vpop.xlane.xlu0 %730 }
 0x3b8   : > { %1540 = vrcp.f32 %v731_v34 }
 0x3bb   : > { %v734_v48 = vpop.xlane.xlu1 %733 }
 0x3bc   : > { %1542 = vrcp.f32 %v734_v48 }
 0x3be   : > { %v1539_v1 = vpop.eup %1538 }
 0x3bf   : > { %v742_v2 = vmul.f32 %v1539_v1, %v1531_v52  ;;  %v848_v61 = vpop.permute.xlu1 %847  ;;  %v737_v3 = vpop.xlane.xlu0 %736 }
 0x3c0   : > { %1544 = vrcp.f32 %v737_v3  ;;  %v853_v7 = vsel %vm755_vm4, %v848_v61, 0  ;;  %v1166_v3 = vld [vmem:[%s2100_s3] sm:$0x1] }
 0x3c1   : > { %v746_v4 = vpack.c.bf16 %v742_v2, %v742_v2 }
 0x3c2   : > { %v1541_v62 = vpop.eup %1540 }
 0x3c3   : > { %v743_v6 = vmul.f32 %v1541_v62, %v1533_v55  ;;  %1405 = vmatmul.mubr.msk.bf16.vlgmr.msra.gmra.mrb[16].mxu0 %vm497_vm2, %v746_v4  ;;  %v800_v8 = vpop.permute.xlu0 %799  ;;  %v896_v63 = vpop.permute.xlu1 %895 }
 0x3c4   : > { %1415 = vmatpush3.bf16.msra.mxu0 %v853_v7  ;;  %v805_v9 = vsel %vm755_vm4, %v800_v8, 0  ;;  %1416 = vmatprep.mubr.msk.bf16.mxu0 %vm1681_vm0, %v1680_v0  ;;  %v901_v16 = vsel %vm755_vm4, %v896_v63, 0  ;;  %v1167_v7 = vunpack.c.l.bf16 %v1166_v3 }
 0x3c5   : > { %1409 = vmatpush3.bf16.msra.mxu1 %v805_v9  ;;  %v747_v5 = vpack.c.bf16 %v743_v6, %v743_v6  ;;  %1426 = vmatprep.subr.bf16.mxu0 %v1680_v0 }
 0x3c6   : > { %v1543_v12 = vpop.eup %1542  ;;  %1420 = vmatprep.subr.bf16.mxu1 %v1680_v0 }
 0x3c7   : > { %v744_v13 = vmul.f32 %v1543_v12, %v1535_v57  ;;  %v948_v14 = vpop.permute.xlu0 %947  ;;  %v1001_v21 = vpop.permute.xlu1 %1000  ;;  %v1171_v12 = vrot.slane %v1167_v7, %v1919_v15 }
 0x3c8   : > { %1411 = vmatmul.mubr.msk.bf16.vlgmr.msra.gmra.mrb[16].mxu1 %vm497_vm2, %v747_v5  ;;  %v955_v19 = vsel %vm497_vm2, %v948_v14, 0  ;;  %v1008_v23 = vsel %vm497_vm2, %v1001_v21, 0 }
 0x3c9   : > { %1421 = vmatpush3.bf16.msra.mxu1 %v901_v16  ;;  %v748_v17 = vpack.c.bf16 %v744_v13, %v744_v13  ;;  %1422 = vmatprep.mubr.msk.bf16.mxu1 %vm1681_vm0, %v1680_v0 }
 0x3ca   : > { %v1545_v18 = vpop.eup %1544  ;;  %1434 = vmatprep.subr.bf16.mxu1 %v1680_v0 }
 0x3cb   : > { %v745_v20 = vmul.f32 %v1545_v18, %v1537_v59  ;;  %1417 = vmatmul.mubr.msk.bf16.vlgmr.msra.gmra.mrb[20].mxu0 %vm497_vm2, %v748_v17  ;;  %v950_v10 = vpop.permute.xlu0 %949  ;;  %v1003_v25 = vpop.permute.xlu1 %1002 }
 0x3cc   : > { %1430 = vmatprep.mubr.msk.bf16.mxu0 %vm1681_vm0, %v1680_v0  ;;  %v958_v24 = vsel %vm497_vm2, %v950_v10, 0  ;;  %v1011_v26 = vsel %vm497_vm2, %v1003_v25, 0 }
 0x3cd   : > { %v749_v22 = vpack.c.bf16 %v745_v20, %v745_v20  ;;  %1427 = vmatpush3.bf16.xpose.msra.mxu0 %v955_v19 }
 0x3ce   : > { %1428 = vmatprep.subr.bf16.mxu0 %v1680_v0 }
 0x3cf   : > { %v1054_v27 = vpop.permute.xlu0 %1053  ;;  %v1107_v36 = vpop.permute.xlu1 %1106 }
 0x3d0   : > { %1423 = vmatmul.mubr.msk.bf16.vlgmr.msra.gmra.mrb[20].mxu1 %vm497_vm2, %v749_v22  ;;  %v1061_v30 = vsel %vm497_vm2, %v1054_v27, 0  ;;  %v1114_v39 = vsel %vm497_vm2, %v1107_v36, 0 }
 0x3d1   : > { %1438 = vmatprep.mubr.msk.bf16.mxu1 %vm1681_vm0, %v1680_v0 }
 0x3d2   : > { %1435 = vmatpush3.bf16.xpose.msra.mxu1 %v1008_v23 }
 0x3d3   : > { %1436 = vmatprep.subr.bf16.mxu1 %v1680_v0  ;;  %v1056_v41 = vpop.permute.xlu0 %1055  ;;  %v1109_v50 = vpop.permute.xlu1 %1108 }
 0x3d4   : > { %v1064_v11 = vsel %vm497_vm2, %v1056_v41, 0  ;;  %v1117_v32 = vsel %vm497_vm2, %v1109_v50, 0 }
 0x3d5   : > { %1429 = vmatpush3.bf16.xpose.msra.mxu0 %v958_v24 }
 0x3d6   : > { %1442 = vmatprep.subr.bf16.mxu0 %v1680_v0 }
 0x3da   : > { %1437 = vmatpush3.bf16.xpose.msra.mxu1 %v1011_v26 }
 0x3db   : > { %1450 = vmatprep.subr.bf16.mxu1 %v1680_v0 }
 0x496   : > { %v793_v28 = vpop.f32.mrb[16].mxu0 }
 0x497   : > { %v943_v29 = vpack.c.bf16 %v793_v28, %v793_v28  ;;  %v1406_v31 = vpop.f32.mrb[17].mxu0 }
 0x498   : > { %v796_v33 = vpop.f32.mrb[18].mxu0 }
 0x499   : > { %v1407_v35 = vpop.f32.mrb[19].mxu0  ;;  %1431 = vmatmul.mubr.msk.bf16.vlgmr.msra.gmra.mrb[24].mxu0 %vm497_vm2, %v943_v29 }
 0x49a   : > { %1443 = vmatpush3.bf16.xpose.msra.mxu0 %v1061_v30  ;;  %1446 = vmatprep.mubr.msk.bf16.mxu0 %vm1681_vm0, %v1680_v0 }
 0x49b   : > { %v841_v37 = vpop.f32.mrb[16].mxu1  ;;  %1444 = vmatprep.subr.bf16.mxu0 %v1680_v0 }
 0x49c   : > { %v944_v38 = vpack.c.bf16 %v841_v37, %v841_v37  ;;  %v1412_v40 = vpop.f32.mrb[17].mxu1 }
 0x49d   : > { %v844_v42 = vpop.f32.mrb[18].mxu1 }
 0x49e   : > { %v1413_v43 = vpop.f32.mrb[19].mxu1  ;;  %v889_v44 = vpop.f32.mrb[20].mxu0  ;;  %1439 = vmatmul.mubr.msk.bf16.vlgmr.msra.gmra.mrb[24].mxu1 %vm497_vm2, %v944_v38 }
 0x49f   : > { %1451 = vmatpush3.bf16.xpose.msra.mxu1 %v1114_v39  ;;  %v1418_v45 = vpop.f32.mrb[21].mxu0  ;;  %1454 = vmatprep.mubr.msk.bf16.mxu1 %vm1681_vm0, %v1680_v0  ;;  %v945_v55 = vpack.c.bf16 %v889_v44, %v889_v44 }
 0x4a0   : > { %v892_v47 = vpop.f32.mrb[22].mxu0  ;;  %1452 = vmatprep.subr.bf16.mxu1 %v1680_v0 }
 0x4a1   : > { %v1419_v49 = vpop.f32.mrb[23].mxu0 }
 0x4a2   : > { %1445 = vmatpush3.bf16.xpose.msra.mxu0 %v1064_v11 }
 0x4a3   : > { %v937_v51 = vpop.f32.mrb[20].mxu1 }
 0x4a4   : > { %v1424_v52 = vpop.f32.mrb[21].mxu1  ;;  %v946_v56 = vpack.c.bf16 %v937_v51, %v937_v51 }
 0x4a5   : > { %v940_v53 = vpop.f32.mrb[22].mxu1 }
 0x4a6   : > { %v1425_v54 = vpop.f32.mrb[23].mxu1 }
 0x4a7   : > { %1453 = vmatpush3.bf16.xpose.msra.mxu1 %v1117_v32 }
 0x4a9   : > { %1447 = vmatmul.mubr.msk.bf16.vlgmr.msra.gmra.mrb[28].mxu0 %vm497_vm2, %v945_v55 }
 0x4ae   : > { %1455 = vmatmul.mubr.msk.bf16.vlgmr.msra.gmra.mrb[28].mxu1 %vm497_vm2, %v946_v56 }
 0x56c   : > { %v994_v57 = vpop.f32.mrb[24].mxu0 }
 0x56d   : > { %v1432_v58 = vpop.f32.mrb[25].mxu0  ;;  %v1159_v46 = vsel %vm282_vm1, %v994_v57, 0.0 }
 0x56e   : > { %v997_v0 = vpop.f32.mrb[26].mxu0 }
 0x56f   : > { %v1433_v59 = vpop.f32.mrb[27].mxu0 }
 0x571   : > { %v1047_v60 = vpop.f32.mrb[24].mxu1 }
 0x572   : > { %v1160_v34 = vsel %vm282_vm1, %v1047_v60, 0.0  ;;  %v1440_v48 = vpop.f32.mrb[25].mxu1 }
 0x573   : > { %v1161_v1 = vadd.f32 %v1160_v34, %v1159_v46  ;;  %v1050_v2 = vpop.f32.mrb[26].mxu1 }
 0x574   : > { %v1441_v61 = vpop.f32.mrb[27].mxu1 }
 0x57c   : > { %v1100_v4 = vpop.f32.mrb[28].mxu0 }
 0x57d   : > { %v1162_v62 = vsel %vm282_vm1, %v1100_v4, 0.0  ;;  %v1448_v6 = vpop.f32.mrb[29].mxu0 }
 0x57e   : > { %v1163_v8 = vadd.f32 %v1162_v62, %v1161_v1  ;;  %v1103_v9 = vpop.f32.mrb[30].mxu0 }
 0x57f   : > { %v1449_v63 = vpop.f32.mrb[31].mxu0 }
 0x581   : > { %v1153_v5 = vpop.f32.mrb[28].mxu1 }
 0x582   : > { %v1164_v13 = vsel %vm282_vm1, %v1153_v5, 0.0  ;;  %v1456_v14 = vpop.f32.mrb[29].mxu1 }
 0x583   : > { %v1165_v16 = vadd.f32 %v1164_v13, %v1163_v8  ;;  %v1156_v17 = vpop.f32.mrb[30].mxu1 }
 0x584   : > { %v1457_v18 = vpop.f32.mrb[31].mxu1 }
 0x585   : > { %v1172_v19 = vadd.f32 %v1171_v12, %v1165_v16 }
 0x587   : > { %1173 = vst.msk [vmem:[%s227_s13] sm:$0xff] %vm282_vm1, %v1172_v19 }
 0x588   : > { %1617 = shalt.err (!%p1614_p7)
}
 0x589   : > { %s1618_s25 = scalar_lea.hbm %s2052_s28, 128  ;;  %s1622_s7 = scalar_lea.hbm %s2101_s4, 256 }
 0x58a   : > { %p1619_p9 = scmp.ne.s32.totalorder %s2052_s28, %s1618_s25  ;;  %p1623_p0 = scmp.lt.u32.totalorder %s2052_s28, %s2101_s4 }
 0x58b   : > { %p1624_p1 = scmp.lt.u32.totalorder %s1622_s7, %s1618_s25  ;;  %p1626_p4 = scmp.lt.u32.totalorder %s1618_s25, %s2052_s28 }
 0x58c   : > { %p1620_p2 = pnand %p1619_p9, %p1802_p12 }
 0x58d   : > { %p1625_p11 = por %p1624_p1, %p1623_p0 }
 0x58e   : > { %p1621_p5 = pneg %p1620_p2 }
 0x58f   : > { %p1627_p6 = por %p1626_p4, %p1625_p11 }
 0x591   : > { %p1628_p8 = pnand %p1627_p6, %p1621_p5 }
 0x593   : > { %1631 = shalt.err (!%p1628_p8)
}
 0x594   : > { %1464 = dma.vmem_to_hbm [thread:$0]  (%p1802_p12), %s2054_s21, 128, %s2052_s28, %s1175_s29  }
 0x595 PF: > { %s1200_s11 = sand.u32 1, %s1662_s15   ;;  %p2116_p10 = scmp.ne.s32.totalorder %s2106_s22, 0 }
 0x596   : > { %p2117_p13 = scmp.ge.s32.totalorder %s1674_s18, 2  ;;  %s1201_s12 = scalar_lea.sflag [#allocation4], %s1200_s11 }
 0x598   : > { %p1475_p3 = pnand %p2117_p13, %p2116_p10 }
 0x59a   : > { %1657 = dma.done.wait (!%p1475_p3), %s1201_s12, 128  }
 0x59b   : > { %1659 = vsyncadd (!%p1475_p3), %s1201_s12, 4294967168  ;;  %p18_p7 = scmp.ge.s32.totalorder %s1767_s27, 4   ;;  %s2118_s15 = smov %s1666_s16 }
 0x59c   : > { %s2119_s16 = smov %s1670_s17  ;;  %s2120_s17 = smov %s1798_s24 }
 0x59d   : > { %s2121_s18 = smov %s1767_s27  ;;  %20 = sbr.rel (!%p18_p7) target bundleno = 6 (0x6), region = 85 }
 0x5a4   :  { %1206 = vsyncpa [#allocation3], 1 }
 0x5a5   :  { %1208 = vsyncpa [#allocation3 + $0x1], 1 }
 0x5a6   :  { %1209 = vsyncpa [#allocation6], 1 }
 0x5a7   :  { %1210 = vsyncpa [#allocation4], 1 }
 0x5a8   :  { %1212 = vsyncpa [#allocation4 + $0x1], 1 }

</bundles_post_ra>
